<compile_context>
chip_gen: v5e
topology: v5e:2x2
jax: 0.10.0
libtpu: 0.0.40
codegen_flags: <defaults>
</compile_context>

<pallas_src>
import functools

import jax
import jax.numpy as jnp
from jax import lax
from jax.experimental import pallas as pl
from jax.experimental.pallas import tpu as pltpu


# --------------------------------------------------------------------------
# pltpu.roll convention probe (run once, outside jit).
# --------------------------------------------------------------------------
def _roll_probe_kernel(x_ref, o_ref):
    o_ref[...] = pltpu.roll(x_ref[...], shift=1, axis=1)


def _roll_matches_numpy() -> bool:
    """True iff pltpu.roll(x, s, ax)[i] == x[(i - s) mod n] (jnp.roll semantics)."""
    x = jnp.broadcast_to(jnp.arange(128, dtype=jnp.float32), (8, 128))
    r = pl.pallas_call(
        _roll_probe_kernel,
        out_shape=jax.ShapeDtypeStruct((8, 128), jnp.float32),
    )(x)
    return bool(jax.device_get(r)[0, 0] == 127.0)


# --------------------------------------------------------------------------
# Fused conv + bias + maxpool + ReLU kernel (one image per grid step).
# --------------------------------------------------------------------------
def _conv_pool_relu_kernel(x_ref, w_ref, b_ref, o_ref, *,
                           ci, co, kh, kw, p, w_in, hp, wp, roll_numpy):
    k1 = kw - 1
    # Column-pool selection matrices, hoisted out of the row loop.
    # pooled[:, k] = max_s conv_row[:, k*p + s]; conv col x lives at acc col x + k1.
    q_idx = lax.broadcasted_iota(jnp.int32, (w_in, wp), 0)
    k_idx = lax.broadcasted_iota(jnp.int32, (w_in, wp), 1)
    sels = [(q_idx == (k_idx * p + s + k1)).astype(jnp.float32) for s in range(p)]
    bias = b_ref[...]                                   # (co, 1) f32

    def shift_right(slab, s):
        # Want out[:, q] == slab[:, q - s] for q >= s (columns q < s are never
        # selected by `sels`, so wrap-around values are don't-care).
        if s == 0:
            return slab
        amount = s if roll_numpy else (w_in - s)
        return pltpu.roll(slab, shift=amount, axis=1)

    def row_body(yp, carry):
        m = None
        for r in range(p):                              # the p conv rows pooled together
            y = yp * p + r
            acc = jnp.zeros((co, w_in), jnp.float32)
            for i in range(kh):
                slab = x_ref[0, y + i]                  # (ci, w_in) f32
                for j in range(kw):
                    sh = shift_right(slab, k1 - j)
                    wtap = w_ref[i * kw + j]            # (co, ci) bf16
                    if ci == 1:
                        acc = acc + wtap.astype(jnp.float32) * sh        # VPU
                    else:
                        acc = acc + jnp.dot(wtap, sh.astype(jnp.bfloat16),
                                            preferred_element_type=jnp.float32)
            m = acc if m is None else jnp.maximum(m, acc)
        pooled = jnp.dot(m, sels[0], preferred_element_type=jnp.float32)
        for s in range(1, p):
            pooled = jnp.maximum(
                pooled, jnp.dot(m, sels[s], preferred_element_type=jnp.float32))
        out = jnp.maximum(pooled + bias, 0.0)           # bias + ReLU (f32)
        o_ref[0, pl.ds(yp, 1)] = out[None].astype(o_ref.dtype)
        return carry

    lax.fori_loop(0, hp, row_body, 0)


def conv_pool_relu(x, w, b, *, kh, kw, p, roll_numpy):
    """x: (N, H, C, W) f32; w: (kh*kw, Co_pad, C) bf16; b: (Co_pad, 1) f32.
    Returns relu(maxpool_p(conv_valid(x) + b)) as (N, Hp, Co_pad, Wp) f32."""
    n, h, ci, w_in = x.shape
    ntaps, co, ci_w = w.shape
    assert ntaps == kh * kw and ci_w == ci
    ho, wo = h - kh + 1, w_in - kw + 1
    hp, wp = ho // p, wo // p
    kernel = functools.partial(
        _conv_pool_relu_kernel, ci=ci, co=co, kh=kh, kw=kw, p=p,
        w_in=w_in, hp=hp, wp=wp, roll_numpy=roll_numpy)
    return pl.pallas_call(
        kernel,
        out_shape=jax.ShapeDtypeStruct((n, hp, co, wp), jnp.float32),
        grid=(n,),
        in_specs=[
            pl.BlockSpec((1, h, ci, w_in), lambda b_: (b_, 0, 0, 0)),
            pl.BlockSpec((kh * kw, co, ci), lambda b_: (0, 0, 0)),
            pl.BlockSpec((co, 1), lambda b_: (0, 0)),
        ],
        out_specs=pl.BlockSpec((1, hp, co, wp), lambda b_: (b_, 0, 0, 0)),
        compiler_params=pltpu.CompilerParams(dimension_semantics=("parallel",)),
    )(x, w, b)


# --------------------------------------------------------------------------
# Fused FC tail: (flatten ->) fc1 + ReLU -> fc3 -> log_softmax, one kernel.
# --------------------------------------------------------------------------
def _fc_tail_kernel(x_ref, w1_ref, b1_ref, w3_ref, b3_ref, o_ref):
    x = x_ref[...].astype(jnp.bfloat16)
    hidden = jnp.dot(x, w1_ref[...], preferred_element_type=jnp.float32) + b1_ref[...]
    hidden = jnp.maximum(hidden, 0.0)                   # fc1 + ReLU
    # F.dropout(training=False) is identity in eval mode.
    logits = jnp.dot(hidden.astype(jnp.bfloat16), w3_ref[...],
                     preferred_element_type=jnp.float32) + b3_ref[...]
    mx = jnp.max(logits, axis=-1, keepdims=True)
    z = logits - mx
    lse = jnp.log(jnp.sum(jnp.exp(z), axis=-1, keepdims=True))
    o_ref[...] = (z - lse).astype(o_ref.dtype)


def fc_tail(x, w1, b1, w3, b3):
    n, k = x.shape
    k2, h = w1.shape
    _, c = w3.shape
    assert k2 == k
    # Bounded tiling over the batch (no unbounded full-M fallback).
    if n <= 256:
        npad = -(-n // 8) * 8
        tm = npad
    else:
        tm = 256
        npad = -(-n // tm) * tm
    if npad != n:
        x = jnp.pad(x, ((0, npad - n), (0, 0)))
    out = pl.pallas_call(
        _fc_tail_kernel,
        out_shape=jax.ShapeDtypeStruct((npad, c), jnp.float32),
        grid=(npad // tm,),
        in_specs=[
            pl.BlockSpec((tm, k), lambda i: (i, 0)),
            pl.BlockSpec((k, h), lambda i: (0, 0)),
            pl.BlockSpec((1, h), lambda i: (0, 0)),
            pl.BlockSpec((h, c), lambda i: (0, 0)),
            pl.BlockSpec((1, c), lambda i: (0, 0)),
        ],
        out_specs=pl.BlockSpec((tm, c), lambda i: (i, 0)),
        compiler_params=pltpu.CompilerParams(dimension_semantics=("parallel",)),
    )(x, w1, b1, w3, b3)
    return out[:n]


# --------------------------------------------------------------------------
# Parameters: torch-layout params -> kernel-layout (padded / reordered, bf16).
# --------------------------------------------------------------------------
def init_params(key):
    """Parameters in the PyTorch layouts (Conv2d: (Co, Ci, KH, KW); Linear: (out, in))."""
    ks = jax.random.split(key, 10)

    def rnd(k, shape, scale):
        return jax.random.normal(k, shape, jnp.float32) * scale

    return {
        "conv1_w": rnd(ks[0], (13, 1, 5, 5), 0.2),   "conv1_b": rnd(ks[1], (13,), 0.1),
        "conv3_w": rnd(ks[2], (26, 13, 3, 3), 0.1),  "conv3_b": rnd(ks[3], (26,), 0.1),
        "conv2_w": rnd(ks[4], (26, 26, 5, 5), 0.05), "conv2_b": rnd(ks[5], (26,), 0.05),
        "fc1_w":   rnd(ks[6], (100, 650), 0.04),     "fc1_b":   rnd(ks[7], (100,), 0.04),
        "fc3_w":   rnd(ks[8], (26, 100), 0.1),       "fc3_b":   rnd(ks[9], (26,), 0.1),
    }


def _prep_conv(w, b, ci_pad, co_pad):
    co, ci, kh, kw = w.shape
    wk = jnp.transpose(w, (2, 3, 0, 1))                          # (kh, kw, co, ci)
    wk = jnp.pad(wk, ((0, 0), (0, 0), (0, co_pad - co), (0, ci_pad - ci)))
    wk = wk.reshape(kh * kw, co_pad, ci_pad).astype(jnp.bfloat16)
    bk = jnp.pad(b, (0, co_pad - co)).reshape(co_pad, 1).astype(jnp.float32)
    return wk, bk


def prepare_params(tp):
    c1w, c1b = _prep_conv(tp["conv1_w"], tp["conv1_b"], ci_pad=1,  co_pad=16)
    c3w, c3b = _prep_conv(tp["conv3_w"], tp["conv3_b"], ci_pad=16, co_pad=32)
    c2w, c2b = _prep_conv(tp["conv2_w"], tp["conv2_b"], ci_pad=32, co_pad=32)
    # torch flattens NCHW (26,5,5): f = c*25 + h*5 + w.
    # The kernel flattens (Hp=5, Co_pad=32, Wp=5): g = h*160 + c*5 + w.
    w1 = tp["fc1_w"].reshape(100, 26, 5, 5)                      # (o, c, h, w)
    w1 = jnp.transpose(w1, (2, 1, 3, 0))                         # (h, c, w, o)
    w1 = jnp.pad(w1, ((0, 0), (0, 32 - 26), (0, 0), (0, 0)))     # pad channels 26->32
    w1 = w1.reshape(5 * 32 * 5, 100).astype(jnp.bfloat16)
    b1 = tp["fc1_b"].reshape(1, 100).astype(jnp.float32)
    w3 = jnp.transpose(tp["fc3_w"]).astype(jnp.bfloat16)         # (100, 26)
    b3 = tp["fc3_b"].reshape(1, 26).astype(jnp.float32)
    return {"c1_w": c1w, "c1_b": c1b, "c3_w": c3w, "c3_b": c3b,
            "c2_w": c2w, "c2_b": c2b,
            "fc1_w": w1, "fc1_b": b1, "fc3_w": w3, "fc3_b": b3}


# --------------------------------------------------------------------------
# Forward pass (inference): matches Net.forward with dropout disabled.
# --------------------------------------------------------------------------
def net_forward(x_nchw, kp, *, roll_numpy=True):
    n = x_nchw.shape[0]
    # NCHW -> NHCW (free: the channel axis has size 1).
    x = jnp.transpose(x_nchw.astype(jnp.float32), (0, 2, 1, 3))          # (N,120,1,120)
    x = conv_pool_relu(x, kp["c1_w"], kp["c1_b"], kh=5, kw=5, p=2,
                       roll_numpy=roll_numpy)                            # (N,58,16,58)
    x = conv_pool_relu(x, kp["c3_w"], kp["c3_b"], kh=3, kw=3, p=4,
                       roll_numpy=roll_numpy)                            # (N,14,32,14)
    # nn.Dropout2d: identity in eval mode.
    x = conv_pool_relu(x, kp["c2_w"], kp["c2_b"], kh=5, kw=5, p=2,
                       roll_numpy=roll_numpy)                            # (N,5,32,5)
    x = x.reshape(n, -1)         # (N, 800); fc1_w rows were reordered/padded to match
                                 # torch's x.view(-1, 650) NCHW flatten.
    return fc_tail(x, kp["fc1_w"], kp["fc1_b"], kp["fc3_w"], kp["fc3_b"])  # (N, 26)


if __name__ == "__main__":
    key = jax.random.PRNGKey(0)
    pkey, xkey = jax.random.split(key)
    params = init_params(pkey)            # torch-layout parameters
    kparams = prepare_params(params)      # kernel-layout (padded / reordered, bf16)
    # Input shape implied by the module: (N, 1, 120, 120) so the flatten is 26*5*5 = 650.
    x = jax.random.normal(xkey, (2, 1, 120, 120), jnp.float32)

    roll_numpy = _roll_matches_numpy()    # one-off probe, outside jit
    fwd = jax.jit(functools.partial(net_forward, roll_numpy=roll_numpy))
    out = jax.block_until_ready(fwd(x, kparams))

    assert out.shape == (2, 26)
    assert bool(jnp.all(jnp.isfinite(out)))
    print("KERNEL_OK")
</pallas_src>

<mosaic_0001>
module attributes {stable_mosaic.version = 11 : i64} {
  func.func @_roll_probe_kernel(%arg0: memref<8x128xf32, #tpu.memory_space<vmem>>, %arg1: memref<8x128xf32, #tpu.memory_space<vmem>>) attributes {dimension_semantics = [], scalar_prefetch = 0 : i64, scratch_operands = 0 : i64, tpu.core_type = #tpu.core_type<tc>} {
    %c0 = arith.constant 0 : index
    %c0_0 = arith.constant 0 : index
    %0 = vector.load %arg0[%c0, %c0_0] : memref<8x128xf32, #tpu.memory_space<vmem>>, vector<8x128xf32>
    %c1_i32 = arith.constant 1 : i32
    %1 = tpu.dynamic_rotate %0 by %c1_i32 dim 1 : vector<8x128xf32>, i32 -> vector<8x128xf32>
    %c0_1 = arith.constant 0 : index
    %c0_2 = arith.constant 0 : index
    %2 = vector.load %arg1[%c0_1, %c0_2] : memref<8x128xf32, #tpu.memory_space<vmem>>, vector<8x128xf32>
    tpu.vector_store %arg1[%c0_1, %c0_2], %1 {strides = array<i32>} : memref<8x128xf32, #tpu.memory_space<vmem>>, vector<8x128xf32>,
    return
  }
}

</mosaic_0001>

<bundles_post_ra>
// kernel: tpu_custom_call.1
= control target key start
LH: loop header
LB: loop body
LE: loop exit
PB: predicated region body
PF: predicated region fallthrough
CT: control target
= control target key end

     0   :  { %6 = vsyncpa [#allocation3], 0  ;;  %s118_s0 = inlined_call_operand.hbm [shape: f32[8,128], index: 0, kind: input, shape index: {}]   ;;  %s119_s1 = inlined_call_operand.hbm [shape: f32[8,128], index: 1, kind: output, shape index: {}]  }
   0x1   :  { %7 = vsyncpa [#allocation4], 0  ;;  %s13_s8 = sshll.u32 %s118_s0, 4  ;;  %s99_s9 = smov [#allocation2]   ;;  %s14_s8 = int_to_ptr.hbm [resolvable:$true] %s13_s8 }
   0x2   :  { %s15_s10 = sshll.u32 %s99_s9, 4  ;;  %s16_s10 = int_to_ptr.vmem [resolvable:$true] %s15_s10 }
   0x3   :  { %18 = dma.hbm_to_vmem [thread:$0]  %s14_s8, 128, %s16_s10, [#allocation3]  }
   0x4   :  { %95 = dma.done.wait [#allocation3], 128  }
   0x5   :  { %96 = vsyncadd [#allocation3], 4294967168  ;;  %v23_v0 = vld [vmem:[#allocation2] sm:$0xff]  ;;  %s100_s11 = smov 1   ;;  %s101_s12 = smov [#allocation5]  }
   0x6   :  { %24 = vrot.lane.b32.xlu0 %v23_v0, %s100_s11  ;;  %s32_s13 = sshll.u32 %s101_s12, 4  ;;  %s34_s16 = sshll.u32 %s119_s1, 4  ;;  %s33_s13 = int_to_ptr.vmem [resolvable:$true] %s32_s13  ;;  %s35_s16 = int_to_ptr.hbm [resolvable:$true] %s34_s16 }
  0x78   :  { %v25_v1 = vpop.permute.xlu0 %24 }
  0x79   :  { %26 = vst [vmem:[#allocation5] sm:$0xff] %v25_v1 }
  0x7a   :  { %37 = dma.vmem_to_hbm [thread:$0]  %s33_s13, 128, %s35_s16, [#allocation4]  }
  0x7b   :  { %97 = dma.done.wait [#allocation4], 128  }
  0x7c   :  { %98 = vsyncadd [#allocation4], 4294967168 }
  0x7d   :  { %42 = vsyncpa [#allocation3], 1 }
  0x7e   :  { %43 = vsyncpa [#allocation4], 1 }

</bundles_post_ra>
